<compile_context>
chip_gen: v7x
topology: tpu7x:2x2x1
jax: 0.10.0
libtpu: 0.0.40
codegen_flags: <defaults>
</compile_context>

<pallas_src>
import jax
import jax.numpy as jnp
from jax.experimental import pallas as pl
from jax.experimental.pallas import tpu as pltpu


def _round_up(x: int, m: int) -> int:
    return ((x + m - 1) // m) * m


def _device_generation():
    try:
        kind = jax.devices()[0].device_kind.lower()
    except Exception:
        return None
    for tag in ("v7", "v6", "v5"):
        if tag in kind:
            return tag
    return None


# Conservative per-generation scoped-VMEM limits we request (bytes).
# v5e/v6e have 128 MiB physical VMEM (default scoped 16/32 MiB); v7x only 64 MiB.
_VMEM_LIMIT = {"v5": 64 << 20, "v6": 64 << 20, "v7": 40 << 20}


def _vmem_limit_bytes() -> int:
    return _VMEM_LIMIT.get(_device_generation(), 32 << 20)


def _default_matmul_dtype():
    # bf16 weights halve the dominant HBM weight stream and feed the 256x256 bf16
    # MXU natively on v6e/v7x.  v5e has no bf16 VPU/EUP and the win is DMA-only,
    # so keep exact f32 there (and on unknown chips) by default.
    gen = _device_generation()
    if gen in ("v6", "v7"):
        return jnp.bfloat16
    return None


def fuse_lstm_params(wx, bx, wh, bh, *, matmul_dtype="auto"):
    """Fuse the two Linear layers ONCE, outside the per-step hot path.

    wx: (D_in, H), wh: (H, H) (PyTorch Linear weights stored transposed, (in, out)),
    bx/bh: (H,).  Returns:
      w_fused: (K_pad, H_pad) in matmul dtype  (K = D_in + H, padded to 128),
      b_fused: (1, H_pad) float32.
    """
    d_in, h_dim = wx.shape
    k = d_in + h_dim
    k_pad = _round_up(k, 128)
    h_pad = _round_up(h_dim, 128)

    if matmul_dtype == "auto":
        matmul_dtype = _default_matmul_dtype()

    w = jnp.concatenate([wx, wh], axis=0)                          # (K, H)
    w = jnp.pad(w, ((0, k_pad - k), (0, h_pad - h_dim)))
    if matmul_dtype is not None:
        w = w.astype(matmul_dtype)
    b = (bx.astype(jnp.float32) + bh.astype(jnp.float32)).reshape(1, h_dim)
    b = jnp.pad(b, ((0, 0), (0, h_pad - h_dim)))
    return w, b


def lstm_cell_kernel(act_ref, c_ref, w_ref, b_ref, h_out_ref, c_out_ref):
    # One fused GEMM on the MXU: z = [x, h] @ [Wx; Wh] + (bx + bh), f32 accumulate.
    z = (jnp.dot(act_ref[...], w_ref[...], preferred_element_type=jnp.float32)
         + b_ref[...])

    # Shared-gate variant: i == f == o == sigmoid(z), g == tanh(z).
    s = jax.nn.sigmoid(z)
    g = jnp.tanh(z)

    # f*c + i*g == s*(c + g) since i == f == s  (one fewer VPU mul per vreg).
    c_new = s * (c_ref[...].astype(jnp.float32) + g)
    h_new = s * jnp.tanh(c_new)

    h_out_ref[...] = h_new.astype(h_out_ref.dtype)
    c_out_ref[...] = c_new.astype(c_out_ref.dtype)


def _pick_tiles(batch, h_pad, k_pad, w_itemsize, vmem_limit):
    sub = 16 if w_itemsize == 2 else 8            # bf16 packs 2 rows per sublane
    bm = min(128, _round_up(batch, sub))
    b_pad = _round_up(batch, bm)

    budget = int(0.6 * vmem_limit)                # headroom for temporaries/spills

    def footprint(bn):
        w = 2 * k_pad * bn * w_itemsize           # double-buffered weight tile
        act = 2 * bm * k_pad * w_itemsize         # double-buffered activation tile
        cio = 3 * 2 * bm * bn * 4                 # c in + h/c out tiles (f32)
        return w + act + cio

    # Largest multiple of 128 that divides H_pad and fits the VMEM budget.
    bn = 128
    cand = 128
    cap = min(h_pad, 2048)
    while cand <= cap:
        if h_pad % cand == 0 and footprint(cand) <= budget:
            bn = cand
        cand += 128

    # v7x megacore: guarantee >=2 blocks along a parallel axis when possible.
    if b_pad // bm == 1 and h_pad // bn == 1 and h_pad >= 256:
        bn = h_pad // 2 if (h_pad // 2) % 128 == 0 else 128

    return bm, b_pad, bn


def lstm_cell(x, h, c, w_fused, b_fused):
    """Shared-gate LSTMCell forward with pre-fused weights.

    x: (B, D_in), h/c: (B, H).  w_fused/b_fused come from fuse_lstm_params().
    Returns (h_new, c_new), each (B, H).
    """
    B, d_in = x.shape
    _, H = h.shape
    K = d_in + H
    k_pad, h_pad = w_fused.shape
    assert k_pad == _round_up(K, 128) and h_pad == _round_up(H, 128), (
        "w_fused does not match x/h shapes; rebuild it with fuse_lstm_params()")

    w_itemsize = jnp.dtype(w_fused.dtype).itemsize
    vmem_limit = _vmem_limit_bytes()
    bm, b_pad, bn = _pick_tiles(B, h_pad, k_pad, w_itemsize, vmem_limit)

    # Promote (never silently downcast) the recurrent state, then match the MXU
    # dtype of the pre-fused weights (bf16 on v6e/v7x by default, else f32).
    io_dtype = jnp.promote_types(x.dtype, h.dtype)
    act = jnp.concatenate([x.astype(io_dtype), h.astype(io_dtype)], axis=1)  # (B, K)
    act = jnp.pad(act, ((0, b_pad - B), (0, k_pad - K))).astype(w_fused.dtype)

    padded_c = (b_pad != B) or (h_pad != H)
    c_in = jnp.pad(c, ((0, b_pad - B), (0, h_pad - H))) if padded_c else c

    # Batch axis innermost/fastest: the (K_pad, bn) weight block index depends only
    # on j, so Pallas skips its re-DMA across consecutive batch tiles.
    grid = (h_pad // bn, b_pad // bm)

    # c_in is a fresh padded copy whenever shapes were not already aligned, so
    # aliasing it into the c output (in-place) is safe; skip otherwise to avoid
    # donating a caller-owned buffer.
    io_aliases = {1: 1} if padded_c else {}

    h_out_pad, c_out_pad = pl.pallas_call(
        lstm_cell_kernel,
        out_shape=(
            jax.ShapeDtypeStruct((b_pad, h_pad), h.dtype),
            jax.ShapeDtypeStruct((b_pad, h_pad), c.dtype),
        ),
        grid=grid,
        in_specs=[
            pl.BlockSpec((bm, k_pad), lambda j, i: (i, 0)),   # fused [x, h]
            pl.BlockSpec((bm, bn),    lambda j, i: (i, j)),   # c
            pl.BlockSpec((k_pad, bn), lambda j, i: (0, j)),   # fused [Wx; Wh]
            pl.BlockSpec((1, bn),     lambda j, i: (0, j)),   # fused bias
        ],
        out_specs=(
            pl.BlockSpec((bm, bn), lambda j, i: (i, j)),      # h_new
            pl.BlockSpec((bm, bn), lambda j, i: (i, j)),      # c_new
        ),
        input_output_aliases=io_aliases,
        compiler_params=pltpu.CompilerParams(
            dimension_semantics=("parallel", "parallel"),
            vmem_limit_bytes=vmem_limit),
    )(act, c_in, w_fused, b_fused)

    return h_out_pad[:B, :H], c_out_pad[:B, :H]


def lstm_cell_unfused(x, h, c, wx, bx, wh, bh, *, matmul_dtype="auto"):
    """Convenience path matching the original module signature.  Prefer fusing the
    weights once with fuse_lstm_params() and reusing them across steps."""
    w_fused, b_fused = fuse_lstm_params(wx, bx, wh, bh, matmul_dtype=matmul_dtype)
    return lstm_cell(x, h, c, w_fused, b_fused)


def reference_lstm_cell(x, h, c, wx, bx, wh, bh):
    z = h @ wh + bh + x @ wx + bx
    i = f = o = jax.nn.sigmoid(z)
    g = jnp.tanh(z)
    c_new = f * c + i * g
    h_new = o * jnp.tanh(c_new)
    return h_new, c_new


if __name__ == "__main__":
    batch = 2
    input_dim = 16
    hidden_dim = 32

    key = jax.random.PRNGKey(0)
    kx, kh, kc, kwx, kbx, kwh, kbh = jax.random.split(key, 7)

    x = jax.random.normal(kx, (batch, input_dim), dtype=jnp.float32)
    h = jax.random.normal(kh, (batch, hidden_dim), dtype=jnp.float32)
    c = jax.random.normal(kc, (batch, hidden_dim), dtype=jnp.float32)

    # PyTorch Linear weight (out, in) stored transposed as (in, out).
    wx = 0.1 * jax.random.normal(kwx, (input_dim, hidden_dim), dtype=jnp.float32)
    bx = 0.1 * jax.random.normal(kbx, (hidden_dim,), dtype=jnp.float32)
    wh = 0.1 * jax.random.normal(kwh, (hidden_dim, hidden_dim), dtype=jnp.float32)
    bh = 0.1 * jax.random.normal(kbh, (hidden_dim,), dtype=jnp.float32)

    h_ref, c_ref = reference_lstm_cell(x, h, c, wx, bx, wh, bh)
    lstm_cell_jit = jax.jit(lstm_cell)

    # 1) Exact f32 MXU path: faithful to the PyTorch module's math.
    w_f32, b_f32 = fuse_lstm_params(wx, bx, wh, bh, matmul_dtype=None)
    h_new, c_new = lstm_cell_jit(x, h, c, w_f32, b_f32)
    jax.block_until_ready((h_new, c_new))
    assert h_new.shape == (batch, hidden_dim) and c_new.shape == (batch, hidden_dim)
    assert jnp.allclose(h_new, h_ref, atol=1e-5, rtol=1e-5)
    assert jnp.allclose(c_new, c_ref, atol=1e-5, rtol=1e-5)

    # 2) Default ("auto") path: bf16 weights on v6e/v7x, f32 elsewhere.  Gate math
    #    and accumulation are always f32, so only the GEMM inputs are rounded.
    w_auto, b_auto = fuse_lstm_params(wx, bx, wh, bh)
    h_auto, c_auto = lstm_cell_jit(x, h, c, w_auto, b_auto)
    jax.block_until_ready((h_auto, c_auto))
    tol = 1e-5 if w_auto.dtype == jnp.float32 else 3e-2
    assert jnp.allclose(h_auto, h_ref, atol=tol, rtol=tol)
    assert jnp.allclose(c_auto, c_ref, atol=tol, rtol=tol)

    print("KERNEL_OK")
</pallas_src>

<mosaic_0001>
module attributes {stable_mosaic.version = 11 : i64} {
  func.func @lstm_cell_kernel(%arg0: i32, %arg1: i32, %arg2: memref<8x128xf32, #tpu.memory_space<vmem>>, %arg3: memref<8x128xf32, #tpu.memory_space<vmem>>, %arg4: memref<128x128xf32, #tpu.memory_space<vmem>>, %arg5: memref<1x128xf32, #tpu.memory_space<vmem>>, %arg6: memref<8x128xf32, #tpu.memory_space<vmem>>, %arg7: memref<8x128xf32, #tpu.memory_space<vmem>>) attributes {dimension_semantics = [#tpu.dimension_semantics<parallel>, #tpu.dimension_semantics<parallel>], iteration_bounds = array<i64: 1, 1>, scalar_prefetch = 0 : i64, scratch_operands = 0 : i64, tpu.core_type = #tpu.core_type<tc>, window_params = [{transform_indices = @transform_0, window_bounds = array<i64: 8, 128>}, {transform_indices = @transform_1, window_bounds = array<i64: 8, 128>}, {transform_indices = @transform_2, window_bounds = array<i64: 128, 128>}, {transform_indices = @transform_3, window_bounds = array<i64: 1, 128>}, {transform_indices = @transform_4, window_bounds = array<i64: 8, 128>}, {transform_indices = @transform_5, window_bounds = array<i64: 8, 128>}]} {
    %c0 = arith.constant 0 : index
    %c0_0 = arith.constant 0 : index
    %0 = vector.load %arg2[%c0, %c0_0] : memref<8x128xf32, #tpu.memory_space<vmem>>, vector<8x128xf32>
    %c0_1 = arith.constant 0 : index
    %c0_2 = arith.constant 0 : index
    %1 = vector.load %arg4[%c0_1, %c0_2] : memref<128x128xf32, #tpu.memory_space<vmem>>, vector<128x128xf32>
    %cst = arith.constant dense<0.000000e+00> : vector<8x128xf32>
    %2 = tpu.matmul %0, %1, %cst {dimension_numbers = #tpu.dot_dimension_numbers<[1], [0], [0], [1], [0, 0, 1, 1], [], []>} : vector<8x128xf32>, vector<128x128xf32>, vector<8x128xf32> -> vector<8x128xf32>
    %c0_3 = arith.constant 0 : index
    %c0_4 = arith.constant 0 : index
    %3 = vector.load %arg5[%c0_3, %c0_4] : memref<1x128xf32, #tpu.memory_space<vmem>>, vector<1x128xf32>
    %4 = vector.broadcast %3 : vector<1x128xf32> to vector<8x128xf32>
    %5 = arith.addf %2, %4 : vector<8x128xf32>
    %6 = arith.negf %5 : vector<8x128xf32>
    %7 = math.exp %6 : vector<8x128xf32>
    %cst_5 = arith.constant 1.000000e+00 : f32
    %8 = vector.broadcast %cst_5 : f32 to vector<8x128xf32>
    %9 = arith.addf %8, %7 : vector<8x128xf32>
    %10 = arith.divf %8, %9 : vector<8x128xf32>
    %11 = math.tanh %5 : vector<8x128xf32>
    %c0_6 = arith.constant 0 : index
    %c0_7 = arith.constant 0 : index
    %12 = vector.load %arg3[%c0_6, %c0_7] : memref<8x128xf32, #tpu.memory_space<vmem>>, vector<8x128xf32>
    %13 = arith.addf %12, %11 : vector<8x128xf32>
    %14 = arith.mulf %10, %13 : vector<8x128xf32>
    %15 = math.tanh %14 : vector<8x128xf32>
    %16 = arith.mulf %10, %15 : vector<8x128xf32>
    %c0_8 = arith.constant 0 : index
    %c0_9 = arith.constant 0 : index
    %17 = vector.load %arg6[%c0_8, %c0_9] : memref<8x128xf32, #tpu.memory_space<vmem>>, vector<8x128xf32>
    tpu.vector_store %arg6[%c0_8, %c0_9], %16 {strides = array<i32>} : memref<8x128xf32, #tpu.memory_space<vmem>>, vector<8x128xf32>,
    %c0_10 = arith.constant 0 : index
    %c0_11 = arith.constant 0 : index
    %18 = vector.load %arg7[%c0_10, %c0_11] : memref<8x128xf32, #tpu.memory_space<vmem>>, vector<8x128xf32>
    tpu.vector_store %arg7[%c0_10, %c0_11], %14 {strides = array<i32>} : memref<8x128xf32, #tpu.memory_space<vmem>>, vector<8x128xf32>,
    return
  }
  func.func @transform_0(%arg0: i32, %arg1: i32) -> (i32, i32) {
    %c0_i32 = arith.constant 0 : i32
    %c0_i32_0 = arith.constant 0 : i32
    return %arg1, %c0_i32 : i32, i32
  }
  func.func @transform_1(%arg0: i32, %arg1: i32) -> (i32, i32) {
    %c0_i32 = arith.constant 0 : i32
    return %arg1, %arg0 : i32, i32
  }
  func.func @transform_2(%arg0: i32, %arg1: i32) -> (i32, i32) {
    %c0_i32 = arith.constant 0 : i32
    %c0_i32_0 = arith.constant 0 : i32
    return %c0_i32, %arg0 : i32, i32
  }
  func.func @transform_3(%arg0: i32, %arg1: i32) -> (i32, i32) {
    %c0_i32 = arith.constant 0 : i32
    %c0_i32_0 = arith.constant 0 : i32
    return %c0_i32, %arg0 : i32, i32
  }
  func.func @transform_4(%arg0: i32, %arg1: i32) -> (i32, i32) {
    %c0_i32 = arith.constant 0 : i32
    return %arg1, %arg0 : i32, i32
  }
  func.func @transform_5(%arg0: i32, %arg1: i32) -> (i32, i32) {
    %c0_i32 = arith.constant 0 : i32
    return %arg1, %arg0 : i32, i32
  }
}

</mosaic_0001>

<bundles_post_ra>
// kernel: lstm_cell.1
= control target key start
LH: loop header
LB: loop body
LE: loop exit
PB: predicated region body
PF: predicated region fallthrough
CT: control target
= control target key end

     0   :  { %11 = vsyncpa [#allocation3], 0  ;;  %s266_s18 = smov [#allocation2]   ;;  %s329_s0 = inlined_call_operand.vmem [shape: f32[8,128], index: 0, kind: input, shape index: {}]   ;;  %s330_s1 = inlined_call_operand.vmem [shape: f32[8,128], index: 1, kind: input, shape index: {}, may-alias: {1,5}]   ;;  %s331_s2 = inlined_call_operand.hbm [shape: f32[128,128], index: 2, kind: input, shape index: {}]   ;;  %s332_s3 = inlined_call_operand.vmem [shape: f32[1,128], index: 3, kind: input, shape index: {}]   ;;  %s333_s4 = inlined_call_operand.vmem [shape: f32[8,128], index: 4, kind: output, shape index: {0}]   ;;  %s334_s5 = inlined_call_operand.vmem [shape: f32[8,128], index: 5, kind: output, shape index: {1}, may-alias: {1,5}]  }
   0x1   :  { %s21_s19 = sshll.u32 %s266_s18, 4  ;;  %s242_s22 = scalar_lea.hbm %s331_s2, 2048  ;;  %s22_s19 = int_to_ptr.vmem [resolvable:$true] %s21_s19 }
   0x2   :  { %p243_p0 = scmp.ne.s32.totalorder %s331_s2, %s242_s22  ;;  %p246_p1 = scmp.lt.u32.totalorder %s242_s22, %s331_s2 }
   0x4   :  { %p248_p2 = pnand %p246_p1, %p243_p0 }
   0x6   :  { %251 = shalt.err (!%p248_p2)
}
   0x7   :  { %s252_s27 = scalar_lea.vmem %s22_s19, 2048  ;;  %p257_p4 = scmp.lt.s32.totalorder %s22_s19, %s22_s19 }
   0x8   :  { %p253_p3 = scmp.ne.s32.totalorder %s22_s19, %s252_s27  ;;  %p258_p5 = scmp.lt.s32.totalorder %s252_s27, %s252_s27 }
   0xa   :  { %p259_p6 = por %p258_p5, %p257_p4 }
   0xc   :  { %p260_p7 = pnand %p259_p6, %p253_p3 }
   0xe   :  { %263 = shalt.err (!%p260_p7)
}
   0xf   :  { %s267_s28 = smov 128   ;;  %s268_s29 = smov 8  }
  0x10   :  { %27 = dma.hbm_to_vmem [thread:$0]  %s331_s2, 2048, %s22_s19, [#allocation3], %s267_s28, %s267_s28, %s268_s29  }
  0x11   :  { %264 = dma.done.wait [#allocation3], 2048  }
  0x12   :  { %265 = vsyncadd [#allocation3], 4294965248  ;;  %v269_v0 = vmov 0.0|0.0   ;;  %vm270_vm0 = vmmov 0   ;;  %v271_v1 = vmov 0.0   ;;  %v34_v2 = vld [vmem:[#allocation2] sm:$0xff] }
  0x13   :  { %204 = vmatprep.subr.bf16.mxu0 %v269_v0  ;;  %201 = vmatprep.mubr.msk.f32.mxu0 %vm270_vm0, %v271_v1  ;;  %v35_v3 = vld [vmem:[#allocation2 + $0x8] sm:$0xff]  ;;  %v36_v4 = vld [vmem:[#allocation2 + $0x10] sm:$0xff]  ;;  %v37_v6 = vld [vmem:[#allocation2 + $0x18] sm:$0xff] }
  0x14   :  { %v205_v5 = vpack.c.bf16 %v35_v3, %v34_v2  ;;  %v208_v7 = vpack.c.bf16 %v37_v6, %v36_v4  ;;  %v38_v8 = vld [vmem:[#allocation2 + $0x20] sm:$0xff]  ;;  %v39_v9 = vld [vmem:[#allocation2 + $0x28] sm:$0xff]  ;;  %v40_v11 = vld [vmem:[#allocation2 + $0x30] sm:$0xff] }
  0x15   :  { %v211_v10 = vpack.c.bf16 %v39_v9, %v38_v8  ;;  %v41_v12 = vld [vmem:[#allocation2 + $0x38] sm:$0xff]  ;;  %v42_v14 = vld [vmem:[#allocation2 + $0x40] sm:$0xff]  ;;  %v43_v15 = vld [vmem:[#allocation2 + $0x48] sm:$0xff] }
  0x16   :  { %206 = vmatpush3.bf16.msra.mxu0 %v205_v5  ;;  %v214_v13 = vpack.c.bf16 %v41_v12, %v40_v11  ;;  %v217_v16 = vpack.c.bf16 %v43_v15, %v42_v14  ;;  %v44_v17 = vld [vmem:[#allocation2 + $0x50] sm:$0xff]  ;;  %v45_v18 = vld [vmem:[#allocation2 + $0x58] sm:$0xff]  ;;  %v46_v20 = vld [vmem:[#allocation2 + $0x60] sm:$0xff] }
  0x17   :  { %207 = vmatprep.subr.bf16.mxu0 %v269_v0  ;;  %v220_v19 = vpack.c.bf16 %v45_v18, %v44_v17  ;;  %v47_v21 = vld [vmem:[#allocation2 + $0x68] sm:$0xff]  ;;  %v48_v23 = vld [vmem:[#allocation2 + $0x70] sm:$0xff]  ;;  %v49_v24 = vld [vmem:[#allocation2 + $0x78] sm:$0xff] }
  0x18   :  { %v223_v22 = vpack.c.bf16 %v47_v21, %v46_v20  ;;  %v226_v25 = vpack.c.bf16 %v49_v24, %v48_v23  ;;  %v33_v26 = vld [vmem:[%s329_s0] sm:$0xff] }
  0x19   :  { %v150_v27 = vld [vmem:[%s332_s3] ss:$0 sm:$0xff] }
  0x1a   :  { %209 = vmatpush3.bf16.msra.mxu0 %v208_v7  ;;  %v134_v35 = vld [vmem:[%s330_s1] sm:$0xff] }
  0x1b   :  { %210 = vmatprep.subr.bf16.mxu0 %v269_v0 }
  0x1e   :  { %212 = vmatpush3.bf16.msra.mxu0 %v211_v10 }
  0x1f   :  { %213 = vmatprep.subr.bf16.mxu0 %v269_v0 }
  0x22   :  { %215 = vmatpush3.bf16.msra.mxu0 %v214_v13 }
  0x23   :  { %216 = vmatprep.subr.bf16.mxu0 %v269_v0 }
  0x26   :  { %218 = vmatpush3.bf16.msra.mxu0 %v217_v16 }
  0x27   :  { %219 = vmatprep.subr.bf16.mxu0 %v269_v0 }
  0x2a   :  { %221 = vmatpush3.bf16.msra.mxu0 %v220_v19 }
  0x2b   :  { %222 = vmatprep.subr.bf16.mxu0 %v269_v0 }
  0x2e   :  { %224 = vmatpush3.bf16.msra.mxu0 %v223_v22 }
  0x2f   :  { %225 = vmatprep.subr.bf16.mxu0 %v269_v0 }
  0x32   :  { %227 = vmatpush3.bf16.msra.mxu0 %v226_v25 }
  0x35   :  { %202 = vmatmul.mubr.f32.vlgmr.msra.gmra.mrb[0].mxu0 %v33_v26 }
 0x108   :  { %v123_v28 = vpop.f32.mrb[0].mxu0 }
 0x109   :  { %v124_v29 = vadd.f32 %v150_v27, %v123_v28  ;;  %v203_v30 = vpop.f32.mrb[1].mxu0 }
 0x10b   :  { %v151_v31 = vmul.f32 -1.442695, %v124_v29 }
 0x10d   :  { %234 = vpow2.f32 %v151_v31 }
 0x10e   :  { %236 = vtanh.f32 %v124_v29 }
 0x117   :  { %v235_v32 = vpop.eup %234 }
 0x118   :  { %v130_v33 = vadd.f32 1.0, %v235_v32  ;;  %v237_v34 = vpop.eup %236 }
 0x119   :  { %v135_v36 = vadd.f32 %v237_v34, %v134_v35 }
 0x11a   :  { %238 = vrcp.f32 %v130_v33 }
 0x124   :  { %v239_v37 = vpop.eup %238 }
 0x125   :  { %v136_v38 = vmul.f32 %v239_v37, %v135_v36 }
 0x127   :  { %240 = vtanh.f32 %v136_v38  ;;  %140 = vst [vmem:[%s334_s5] sm:$0xff] %v136_v38 }
 0x131   :  { %v241_v39 = vpop.eup %240 }
 0x132   :  { %v138_v40 = vmul.f32 %v241_v39, %v239_v37 }
 0x134   :  { %139 = vst [vmem:[%s333_s4] sm:$0xff] %v138_v40 }
 0x135   :  { %149 = vsyncpa [#allocation3], 1 }

</bundles_post_ra>
